<compile_context>
chip_gen: v6e
topology: v6e:2x2x1
jax: 0.10.0
libtpu: 0.0.40
codegen_flags: <defaults>
</compile_context>

<pallas_src>
import functools

import jax
import jax.numpy as jnp
from jax import lax
from jax.experimental import pallas as pl
from jax.experimental.pallas import tpu as pltpu

FEATURE_DIM = 128
EPS = 1e-12              # F.normalize default eps (clamp applied to the norm)

_LANE = 128
_SUBLANE = 8
_TB_CAP = 256            # batch tile cap (>= MXU height floor on all generations)
_TC_CAP = 2048           # class tile cap for the streamed-weight fallback
_RESIDENT_VMEM_BUDGET = 24 * 1024 * 1024   # stays under v7x's 32 MiB scoped default
_VMEM_LIMIT = 32 * 1024 * 1024


def _round_up(a: int, m: int) -> int:
    return (a + m - 1) // m * m


def _batch_tiles(B: int):
    """Pick (TB, Bp, n_tiles) with balanced tiles and minimal padding."""
    if B <= _TB_CAP:
        return B, B, 1                       # full-array block, zero padding
    n = pl.cdiv(B, _TB_CAP)
    TB = _round_up(pl.cdiv(B, n), _SUBLANE)
    Bp = _round_up(B, TB)
    return TB, Bp, Bp // TB


def _class_tiles(C: int):
    """Pick (TC, Cp, n_tiles) for the streamed fallback (lane-dense, balanced)."""
    Cp = _round_up(C, _LANE)
    n = pl.cdiv(Cp, _TC_CAP)
    TC = _round_up(pl.cdiv(Cp, n), _LANE)
    Cp = TC * n
    return TC, Cp, n


# ----------------------------- kernels --------------------------------------


def _l2_normalize_kernel(x_ref, out_ref):
    # out = x / max(||x||_2, eps) == x * rsqrt(max(||x||^2, eps^2))
    x = x_ref[...].astype(jnp.float32)
    sq = jnp.sum(x * x, axis=1, keepdims=True)
    out_ref[...] = (x * lax.rsqrt(jnp.maximum(sq, EPS * EPS))).astype(out_ref.dtype)


def _normalize_classify_kernel(x_ref, w_ref, b_ref, out_ref, logits_ref):
    # Fused path: whole classifier weight is VMEM-resident (constant index_map).
    # x_ref:      [TB, D]   input feature tile
    # w_ref:      [C,  D]   full classifier weight (native nn.Linear layout)
    # b_ref:      [1,  C]   full classifier bias
    # out_ref:    [TB, D]   normalized features
    # logits_ref: [TB, C]   logits
    x = x_ref[...].astype(jnp.float32)
    sq = jnp.sum(x * x, axis=1, keepdims=True)
    out = x * lax.rsqrt(jnp.maximum(sq, EPS * EPS))
    out_ref[...] = out.astype(out_ref.dtype)

    w = w_ref[...]
    logits = lax.dot_general(
        out.astype(w.dtype), w,
        dimension_numbers=(((1,), (1,)), ((), ())),   # out @ W^T (trans_b on MXU)
        preferred_element_type=jnp.float32,
    )
    logits_ref[...] = (logits + b_ref[...].astype(jnp.float32)).astype(logits_ref.dtype)


def _classify_kernel(f_ref, w_ref, b_ref, logits_ref):
    # Streamed path: f is already L2-normalized; weight streams once
    # (class axis is the OUTER grid axis, so each weight tile is fetched once).
    f = f_ref[...]
    w = w_ref[...]
    logits = lax.dot_general(
        f.astype(w.dtype), w,
        dimension_numbers=(((1,), (1,)), ((), ())),
        preferred_element_type=jnp.float32,
    )
    logits_ref[...] = (logits + b_ref[...].astype(jnp.float32)).astype(logits_ref.dtype)


# ----------------------------- wrappers -------------------------------------


def _l2_normalize(x):
    B, D = x.shape
    TB, Bp, nbt = _batch_tiles(B)
    x_p = x if Bp == B else jnp.pad(x, ((0, Bp - B), (0, 0)))
    out = pl.pallas_call(
        _l2_normalize_kernel,
        out_shape=jax.ShapeDtypeStruct((Bp, D), x.dtype),
        grid_spec=pltpu.PrefetchScalarGridSpec(
            num_scalar_prefetch=0,
            grid=(nbt,),
            in_specs=[pl.BlockSpec((TB, D), lambda i: (i, 0))],
            out_specs=pl.BlockSpec((TB, D), lambda i: (i, 0)),
        ),
        compiler_params=pltpu.CompilerParams(
            dimension_semantics=("parallel",),
            vmem_limit_bytes=_VMEM_LIMIT,
        ),
    )(x_p)
    return out if Bp == B else out[:B]


@functools.partial(jax.jit,
                   static_argnames=("add_logits", "reid", "_force_streamed"))
def exploring_net_forward(x, weight=None, bias=None, add_logits=True, reid=True,
                          _force_streamed=False):
    """x: [B, 128]; weight: [num_classes, 128] (native nn.Linear); bias: [num_classes]."""
    B, D = x.shape
    assert D == FEATURE_DIM, f"feature_dim must be {FEATURE_DIM}"

    if not (reid and add_logits):
        # Feature-only path: no weight stream / matmul at all.
        return _l2_normalize(x)

    C = weight.shape[0]
    TB, Bp, nbt = _batch_tiles(B)

    x_it = x.dtype.itemsize
    w_it = weight.dtype.itemsize
    o_it = x_it

    # Estimated VMEM need of the fused resident-weight layout (2x buffering).
    resident_vmem = (2 * TB * D * x_it          # x tiles
                     + 2 * C * D * w_it         # weight (resident)
                     + 2 * C * 4                # bias
                     + 2 * TB * D * o_it        # out tiles
                     + 2 * TB * C * o_it)       # logits tiles

    if resident_vmem <= _RESIDENT_VMEM_BUDGET and not _force_streamed:
        # ---- Mode A: weight fully VMEM-resident, single (batch) grid axis ----
        x_p = x if Bp == B else jnp.pad(x, ((0, Bp - B), (0, 0)))
        b2 = bias.reshape(1, C)

        cost = pl.CostEstimate(
            flops=2 * Bp * D * C,
            transcendentals=Bp,                 # one rsqrt per row
            bytes_accessed=(x_it * Bp * D + w_it * C * D + bias.dtype.itemsize * C
                            + o_it * Bp * D + o_it * Bp * C),
        )
        out, logits = pl.pallas_call(
            _normalize_classify_kernel,
            out_shape=(
                jax.ShapeDtypeStruct((Bp, D), x.dtype),
                jax.ShapeDtypeStruct((Bp, C), x.dtype),
            ),
            grid_spec=pltpu.PrefetchScalarGridSpec(
                num_scalar_prefetch=0,
                grid=(nbt,),
                in_specs=[
                    pl.BlockSpec((TB, D), lambda i: (i, 0)),   # x (batch-tiled)
                    pl.BlockSpec((C, D), lambda i: (0, 0)),    # weight: resident
                    pl.BlockSpec((1, C), lambda i: (0, 0)),    # bias: resident
                ],
                out_specs=(
                    pl.BlockSpec((TB, D), lambda i: (i, 0)),   # normalized features
                    pl.BlockSpec((TB, C), lambda i: (i, 0)),   # logits
                ),
            ),
            compiler_params=pltpu.CompilerParams(
                dimension_semantics=("parallel",),
                vmem_limit_bytes=_VMEM_LIMIT,
            ),
            cost_estimate=cost,
        )(x_p, weight, b2)
        if Bp != B:
            out, logits = out[:B], logits[:B]
        return out, logits

    # ---- Mode B: huge classifier -> normalize once, then stream the weight
    #      exactly once with the class axis OUTER (parallel for v7x megacore). ----
    out = _l2_normalize(x)
    TC, Cp, nct = _class_tiles(C)
    f_p = out if Bp == B else jnp.pad(out, ((0, Bp - B), (0, 0)))
    w_p = weight if Cp == C else jnp.pad(weight, ((0, Cp - C), (0, 0)))
    b_p = bias if Cp == C else jnp.pad(bias, (0, Cp - C))
    b2 = b_p.reshape(1, Cp)

    cost = pl.CostEstimate(
        flops=2 * Bp * D * Cp,
        transcendentals=0,
        bytes_accessed=(x_it * Bp * D * nct          # features re-read per class tile
                        + w_it * Cp * D              # weight streamed exactly once
                        + bias.dtype.itemsize * Cp
                        + o_it * Bp * Cp),           # logits out
    )
    logits = pl.pallas_call(
        _classify_kernel,
        out_shape=jax.ShapeDtypeStruct((Bp, Cp), x.dtype),
        grid_spec=pltpu.PrefetchScalarGridSpec(
            num_scalar_prefetch=0,
            grid=(nct, nbt),                                   # class OUTER, batch inner
            in_specs=[
                pl.BlockSpec((TB, D), lambda j, i: (i, 0)),    # normalized features
                pl.BlockSpec((TC, D), lambda j, i: (j, 0)),    # weight (streamed once)
                pl.BlockSpec((1, TC), lambda j, i: (0, j)),    # bias
            ],
            out_specs=pl.BlockSpec((TB, TC), lambda j, i: (i, j)),
        ),
        compiler_params=pltpu.CompilerParams(
            dimension_semantics=("parallel", "arbitrary"),
            vmem_limit_bytes=_VMEM_LIMIT,
        ),
        cost_estimate=cost,
    )(f_p, w_p, b2)
    if Bp != B or Cp != C:
        logits = logits[:B, :C]
    return out, logits


if __name__ == "__main__":
    key = jax.random.PRNGKey(0)
    k_x, k_w, k_b = jax.random.split(key, 3)

    B = 8                  # small demo batch
    D = FEATURE_DIM        # 128, fixed by the module
    C = 1000               # num_classes (module default)

    x = jax.random.normal(k_x, (B, D), dtype=jnp.float32)
    # nn.Linear default init: uniform(-1/sqrt(in), 1/sqrt(in))
    bound = 1.0 / (D ** 0.5)
    weight = jax.random.uniform(k_w, (C, D), minval=-bound, maxval=bound,
                                dtype=jnp.float32)
    bias = jax.random.uniform(k_b, (C,), minval=-bound, maxval=bound,
                              dtype=jnp.float32)

    # Reference in plain JAX (F.normalize + Linear).
    norm = jnp.maximum(jnp.linalg.norm(x, axis=1, keepdims=True), EPS)
    out_ref = x / norm
    logits_ref = out_ref @ weight.T + bias

    # Mode A: resident-weight fused kernel (the common case).
    out, logits = exploring_net_forward(x, weight, bias, add_logits=True)
    jax.block_until_ready((out, logits))
    assert out.shape == (B, D) and logits.shape == (B, C)
    assert jnp.allclose(out, out_ref, atol=1e-5), "normalize mismatch (mode A)"
    assert jnp.allclose(logits, logits_ref, atol=1e-4), "logits mismatch (mode A)"

    # Mode B: streamed-weight fallback (exercised here via the force flag).
    out_b, logits_b = exploring_net_forward(x, weight, bias, add_logits=True,
                                            _force_streamed=True)
    jax.block_until_ready((out_b, logits_b))
    assert jnp.allclose(out_b, out_ref, atol=1e-5), "normalize mismatch (mode B)"
    assert jnp.allclose(logits_b, logits_ref, atol=1e-4), "logits mismatch (mode B)"

    # Feature-only path (add_logits=False): normalize-only kernel, no matmul.
    out_only = exploring_net_forward(x, weight, bias, add_logits=False)
    jax.block_until_ready(out_only)
    assert jnp.allclose(out_only, out_ref, atol=1e-5), "normalize mismatch (feature-only)"

    print("KERNEL_OK")
</pallas_src>

<mosaic_0001>
module attributes {stable_mosaic.version = 11 : i64} {
  func.func @_normalize_classify_kernel(%arg0: i32, %arg1: memref<8x128xf32, #tpu.memory_space<vmem>>, %arg2: memref<1000x128xf32, #tpu.memory_space<vmem>>, %arg3: memref<1x1000xf32, #tpu.memory_space<vmem>>, %arg4: memref<8x128xf32, #tpu.memory_space<vmem>>, %arg5: memref<8x1000xf32, #tpu.memory_space<vmem>>) attributes {dimension_semantics = [#tpu.dimension_semantics<parallel>], iteration_bounds = array<i64: 1>, scalar_prefetch = 0 : i64, scratch_operands = 0 : i64, tpu.core_type = #tpu.core_type<tc>, window_params = [{transform_indices = @transform_0, window_bounds = array<i64: 8, 128>}, {pipeline_mode = #tpu.pipeline_mode<synchronous>, transform_indices = @transform_1, window_bounds = array<i64: 1000, 128>}, {pipeline_mode = #tpu.pipeline_mode<synchronous>, transform_indices = @transform_2, window_bounds = array<i64: 1, 1000>}, {transform_indices = @transform_3, window_bounds = array<i64: 8, 128>}, {transform_indices = @transform_4, window_bounds = array<i64: 8, 1000>}]} {
    %c0 = arith.constant 0 : index
    %c0_0 = arith.constant 0 : index
    %0 = vector.load %arg1[%c0, %c0_0] : memref<8x128xf32, #tpu.memory_space<vmem>>, vector<8x128xf32>
    %1 = arith.mulf %0, %0 : vector<8x128xf32>
    %cst = arith.constant dense<0.000000e+00> : vector<8xf32>
    %2 = vector.multi_reduction <add>, %1, %cst [1] : vector<8x128xf32> to vector<8xf32>
    %3 = vector.shape_cast %2 : vector<8xf32> to vector<8x1xf32>
    %cst_1 = arith.constant 1.000000e-24 : f32
    %4 = vector.broadcast %cst_1 : f32 to vector<8x1xf32>
    %5 = arith.maximumf %3, %4 : vector<8x1xf32>
    %6 = math.rsqrt %5 : vector<8x1xf32>
    %7 = vector.broadcast %6 : vector<8x1xf32> to vector<8x128xf32>
    %8 = arith.mulf %0, %7 : vector<8x128xf32>
    %c0_2 = arith.constant 0 : index
    %c0_3 = arith.constant 0 : index
    %9 = vector.load %arg4[%c0_2, %c0_3] : memref<8x128xf32, #tpu.memory_space<vmem>>, vector<8x128xf32>
    tpu.vector_store %arg4[%c0_2, %c0_3], %8 {strides = array<i32>} : memref<8x128xf32, #tpu.memory_space<vmem>>, vector<8x128xf32>,
    %c0_4 = arith.constant 0 : index
    %c0_5 = arith.constant 0 : index
    %10 = vector.load %arg2[%c0_4, %c0_5] : memref<1000x128xf32, #tpu.memory_space<vmem>>, vector<1000x128xf32>
    %cst_6 = arith.constant dense<0.000000e+00> : vector<8x1000xf32>
    %11 = tpu.matmul %8, %10, %cst_6 {dimension_numbers = #tpu.dot_dimension_numbers<[1], [1], [0], [0], [0, 0, 1, 0], [], []>} : vector<8x128xf32>, vector<1000x128xf32>, vector<8x1000xf32> -> vector<8x1000xf32>
    %c0_7 = arith.constant 0 : index
    %c0_8 = arith.constant 0 : index
    %12 = vector.load %arg3[%c0_7, %c0_8] : memref<1x1000xf32, #tpu.memory_space<vmem>>, vector<1x1000xf32>
    %13 = vector.broadcast %12 : vector<1x1000xf32> to vector<8x1000xf32>
    %14 = arith.addf %11, %13 : vector<8x1000xf32>
    %c0_9 = arith.constant 0 : index
    %c0_10 = arith.constant 0 : index
    %15 = vector.load %arg5[%c0_9, %c0_10] : memref<8x1000xf32, #tpu.memory_space<vmem>>, vector<8x1000xf32>
    tpu.vector_store %arg5[%c0_9, %c0_10], %14 {strides = array<i32>} : memref<8x1000xf32, #tpu.memory_space<vmem>>, vector<8x1000xf32>,
    return
  }
  func.func @transform_0(%arg0: i32) -> (i32, i32) {
    %c0_i32 = arith.constant 0 : i32
    %c0_i32_0 = arith.constant 0 : i32
    return %arg0, %c0_i32 : i32, i32
  }
  func.func @transform_1(%arg0: i32) -> (i32, i32) {
    %c0_i32 = arith.constant 0 : i32
    %c0_i32_0 = arith.constant 0 : i32
    %c0_i32_1 = arith.constant 0 : i32
    return %c0_i32, %c0_i32_0 : i32, i32
  }
  func.func @transform_2(%arg0: i32) -> (i32, i32) {
    %c0_i32 = arith.constant 0 : i32
    %c0_i32_0 = arith.constant 0 : i32
    %c0_i32_1 = arith.constant 0 : i32
    return %c0_i32, %c0_i32_0 : i32, i32
  }
  func.func @transform_3(%arg0: i32) -> (i32, i32) {
    %c0_i32 = arith.constant 0 : i32
    %c0_i32_0 = arith.constant 0 : i32
    return %arg0, %c0_i32 : i32, i32
  }
  func.func @transform_4(%arg0: i32) -> (i32, i32) {
    %c0_i32 = arith.constant 0 : i32
    %c0_i32_0 = arith.constant 0 : i32
    return %arg0, %c0_i32 : i32, i32
  }
}

</mosaic_0001>

<bundles_post_ra>
// kernel: exploring_net_forward.1
= control target key start
LH: loop header
LB: loop body
LE: loop exit
PB: predicated region body
PF: predicated region fallthrough
CT: control target
= control target key end

     0   :  { %10 = vsyncpa [#allocation3], 0  ;;  %s866_s0 = inlined_call_operand.hbm [shape: f32[8,128], index: 0, kind: input, shape index: {}]   ;;  %s867_s1 = inlined_call_operand.hbm [shape: f32[1000,128], index: 1, kind: input, shape index: {}]   ;;  %s868_s2 = inlined_call_operand.hbm [shape: f32[1,1000], index: 2, kind: input, shape index: {}]   ;;  %s869_s3 = inlined_call_operand.hbm [shape: f32[8,128], index: 3, kind: output, shape index: {0}]   ;;  %s870_s4 = inlined_call_operand.hbm [shape: f32[8,1000], index: 4, kind: output, shape index: {1}]  }
   0x1   :  { %11 = vsyncpa [#allocation6], 0 }
   0x2   :  { %12 = vsyncpa [#allocation4], 0 }
   0x3   :  { %13 = vsyncpa [#allocation10], 0  ;;  %s773_s15 = smov [#allocation5]  }
   0x4   :  { %s29_s16 = sshll.u32 %s773_s15, 4  ;;  %s30_s16 = int_to_ptr.vmem [resolvable:$true] %s29_s16 }
   0x5   :  { %s673_s17 = scalar_lea.vmem %s30_s16, 16000  ;;  %p678_p1 = scmp.lt.s32.totalorder %s30_s16, %s30_s16 }
   0x6   :  { %p674_p0 = scmp.ne.s32.totalorder %s30_s16, %s673_s17  ;;  %p679_p2 = scmp.lt.s32.totalorder %s673_s17, %s673_s17 }
   0x8   :  { %p680_p3 = por %p679_p2, %p678_p1 }
   0xa   :  { %p681_p4 = pnand %p680_p3, %p674_p0 }
   0xc   :  { %684 = shalt.err (!%p681_p4)
}
   0xd   :  { %s774_s18 = smov 128   ;;  %s775_s19 = smov 8  }
   0xe   :  { %35 = dma.hbm_to_vmem [thread:$0]  %s867_s1, 16000, %s30_s16, [#allocation6], %s774_s18, %s774_s18, %s775_s19  }
   0xf   :  { %s776_s22 = smov [#allocation2]   ;;  %s777_s24 = smov [#allocation7]  }
  0x10   :  { %s20_s23 = sshll.u32 %s776_s22, 4  ;;  %s42_s25 = sshll.u32 %s777_s24, 4  ;;  %s21_s23 = int_to_ptr.vmem [resolvable:$true] %s20_s23  ;;  %s43_s25 = int_to_ptr.vmem [resolvable:$true] %s42_s25 }
  0x11   :  { %s693_s26 = scalar_lea.vmem %s21_s23, 128  ;;  %p698_p6 = scmp.lt.s32.totalorder %s21_s23, %s21_s23 }
  0x12   :  { %p694_p5 = scmp.ne.s32.totalorder %s21_s23, %s693_s26  ;;  %p699_p7 = scmp.lt.s32.totalorder %s693_s26, %s693_s26 }
  0x14   :  { %p700_p8 = por %p699_p7, %p698_p6 }
  0x16   :  { %p701_p9 = pnand %p700_p8, %p694_p5 }
  0x18   :  { %704 = shalt.err (!%p701_p9)
}
  0x19   :  { %23 = dma.hbm_to_vmem [thread:$0]  %s866_s0, 128, %s21_s23, [#allocation3]  }
  0x1a   :  { %s713_s29 = scalar_lea.vmem %s43_s25, 128  ;;  %p718_p11 = scmp.lt.s32.totalorder %s43_s25, %s43_s25 }
  0x1b   :  { %p714_p10 = scmp.ne.s32.totalorder %s43_s25, %s713_s29  ;;  %p719_p12 = scmp.lt.s32.totalorder %s713_s29, %s713_s29 }
  0x1d   :  { %p720_p13 = por %p719_p12, %p718_p11 }
  0x1f   :  { %p721_p0 = pnand %p720_p13, %p714_p10 }
  0x21   :  { %724 = shalt.err (!%p721_p0)
}
  0x22   :  { %45 = dma.hbm_to_vmem [thread:$0]  %s868_s2, 128, %s43_s25, [#allocation6]  }
  0x23   :  { %765 = dma.done.wait [#allocation3], 128  }
  0x24   :  { %766 = vsyncadd [#allocation3], 4294967168 }
  0x25   :  { %767 = dma.done.wait [#allocation6], 16128  }
  0x26   :  { %768 = vsyncadd [#allocation6], 4294951168  ;;  %v815_v0 = vld [vmem:[#allocation2] sm:$0xff]  ;;  %v93_v6 = vld [vmem:[#allocation5 + $0xf0] sm:$0xff]  ;;  %s779_s0 = smov [#allocation8]  }
  0x27   :  { %v94_v1 = vld [vmem:[#allocation5 + $0xf8] sm:$0xff]  ;;  %v56_v3 = vmul.f32 %v815_v0, %v815_v0  ;;  %v125_v7 = vld [vmem:[#allocation5 + $0x1f0] sm:$0xff]  ;;  %v92_v10 = vld [vmem:[#allocation5 + $0xe8] sm:$0xff]  ;;  %s529_s2 = sshll.u32 %s779_s0, 4  ;;  %s530_s2 = int_to_ptr.vmem [resolvable:$true] %s529_s2 }
  0x28   :  { %v126_v2 = vld [vmem:[#allocation5 + $0x1f8] sm:$0xff]  ;;  %553 = vmatprep.subr.mxu0 %v94_v1  ;;  %v77_v8 = vld [vmem:[#allocation5 + $0x70] sm:$0xff]  ;;  %v124_v11 = vld [vmem:[#allocation5 + $0x1e8] sm:$0xff]  ;;  %s725_s5 = scalar_lea.vmem %s530_s2, 128  ;;  %p730_p2 = scmp.lt.s32.totalorder %s530_s2, %s530_s2 }
  0x29   :  { %587 = vmatprep.subr.mxu1 %v126_v2  ;;  %v78_v4 = vld [vmem:[#allocation5 + $0x78] sm:$0xff]  ;;  %57 = vadd.xlane.f32.xlu0 %v56_v3  ;;  %v109_v9 = vld [vmem:[#allocation5 + $0x170] sm:$0xff]  ;;  %v76_v12 = vld [vmem:[#allocation5 + $0x68] sm:$0xff]  ;;  %p726_p1 = scmp.ne.s32.totalorder %s530_s2, %s725_s5  ;;  %p731_p3 = scmp.lt.s32.totalorder %s725_s5, %s725_s5 }
  0x2a   :  { %v110_v5 = vld [vmem:[#allocation5 + $0x178] sm:$0xff]  ;;  %554 = vmatpush3.xpose.msra.mxu0 %v78_v4  ;;  %v108_v13 = vld [vmem:[#allocation5 + $0x168] sm:$0xff]  ;;  %v91_v14 = vld [vmem:[#allocation5 + $0xe0] sm:$0xff]  ;;  %v778_v4 = vmov 0.0  }
  0x2b   :  { %588 = vmatpush3.xpose.msra.mxu1 %v110_v5  ;;  %555 = vmatprep.subr.mxu0 %v93_v6  ;;  %v123_v15 = vld [vmem:[#allocation5 + $0x1e0] sm:$0xff]  ;;  %v90_v18 = vld [vmem:[#allocation5 + $0xd8] sm:$0xff]  ;;  %v89_v22 = vld [vmem:[#allocation5 + $0xd0] sm:$0xff]  ;;  %p732_p4 = por %p731_p3, %p730_p2 }
  0x2c   :  { %589 = vmatprep.subr.mxu1 %v125_v7  ;;  %v75_v16 = vld [vmem:[#allocation5 + $0x60] sm:$0xff]  ;;  %v122_v19 = vld [vmem:[#allocation5 + $0x1d8] sm:$0xff]  ;;  %v121_v23 = vld [vmem:[#allocation5 + $0x1d0] sm:$0xff] }
  0x2d   :  { %v107_v17 = vld [vmem:[#allocation5 + $0x160] sm:$0xff]  ;;  %v74_v20 = vld [vmem:[#allocation5 + $0x58] sm:$0xff]  ;;  %v73_v24 = vld [vmem:[#allocation5 + $0x50] sm:$0xff]  ;;  %p733_p5 = pnand %p732_p4, %p726_p1 }
  0x2e   :  { %556 = vmatpush3.xpose.msra.mxu0 %v77_v8  ;;  %v106_v21 = vld [vmem:[#allocation5 + $0x158] sm:$0xff]  ;;  %v105_v25 = vld [vmem:[#allocation5 + $0x150] sm:$0xff]  ;;  %v88_v26 = vld [vmem:[#allocation5 + $0xc8] sm:$0xff] }
  0x2f   :  { %590 = vmatpush3.xpose.msra.mxu1 %v109_v9  ;;  %557 = vmatprep.subr.mxu0 %v92_v10  ;;  %v120_v27 = vld [vmem:[#allocation5 + $0x1c8] sm:$0xff]  ;;  %v87_v30 = vld [vmem:[#allocation5 + $0xc0] sm:$0xff]  ;;  %v86_v34 = vld [vmem:[#allocation5 + $0xb8] sm:$0xff] }
  0x30   :  { %591 = vmatprep.subr.mxu1 %v124_v11  ;;  %v72_v28 = vld [vmem:[#allocation5 + $0x48] sm:$0xff]  ;;  %v119_v31 = vld [vmem:[#allocation5 + $0x1c0] sm:$0xff]  ;;  %v118_v35 = vld [vmem:[#allocation5 + $0x1b8] sm:$0xff] }
  0x31   :  { %v104_v29 = vld [vmem:[#allocation5 + $0x148] sm:$0xff]  ;;  %v71_v32 = vld [vmem:[#allocation5 + $0x40] sm:$0xff]  ;;  %v70_v36 = vld [vmem:[#allocation5 + $0x38] sm:$0xff] }
  0x32   :  { %558 = vmatpush3.xpose.msra.mxu0 %v76_v12  ;;  %v103_v33 = vld [vmem:[#allocation5 + $0x140] sm:$0xff]  ;;  %v102_v37 = vld [vmem:[#allocation5 + $0x138] sm:$0xff]  ;;  %v85_v38 = vld [vmem:[#allocation5 + $0xb0] sm:$0xff] }
  0x33   :  { %592 = vmatpush3.xpose.msra.mxu1 %v108_v13  ;;  %559 = vmatprep.subr.mxu0 %v91_v14  ;;  %v117_v39 = vld [vmem:[#allocation5 + $0x1b0] sm:$0xff]  ;;  %v84_v42 = vld [vmem:[#allocation5 + $0xa8] sm:$0xff]  ;;  %v83_v46 = vld [vmem:[#allocation5 + $0xa0] sm:$0xff] }
  0x34   :  { %593 = vmatprep.subr.mxu1 %v123_v15  ;;  %v69_v40 = vld [vmem:[#allocation5 + $0x30] sm:$0xff]  ;;  %v116_v43 = vld [vmem:[#allocation5 + $0x1a8] sm:$0xff]  ;;  %v115_v47 = vld [vmem:[#allocation5 + $0x1a0] sm:$0xff] }
  0x35   :  { %v101_v41 = vld [vmem:[#allocation5 + $0x130] sm:$0xff]  ;;  %v68_v44 = vld [vmem:[#allocation5 + $0x28] sm:$0xff]  ;;  %v67_v48 = vld [vmem:[#allocation5 + $0x20] sm:$0xff] }
  0x36   :  { %560 = vmatpush3.xpose.msra.mxu0 %v75_v16  ;;  %v100_v45 = vld [vmem:[#allocation5 + $0x128] sm:$0xff]  ;;  %v99_v49 = vld [vmem:[#allocation5 + $0x120] sm:$0xff]  ;;  %v82_v50 = vld [vmem:[#allocation5 + $0x98] sm:$0xff] }
  0x37   :  { %594 = vmatpush3.xpose.msra.mxu1 %v107_v17  ;;  %561 = vmatprep.subr.mxu0 %v90_v18  ;;  %v114_v51 = vld [vmem:[#allocation5 + $0x198] sm:$0xff]  ;;  %v81_v54 = vld [vmem:[#allocation5 + $0x90] sm:$0xff]  ;;  %v80_v58 = vld [vmem:[#allocation5 + $0x88] sm:$0xff] }
  0x38   :  { %595 = vmatprep.subr.mxu1 %v122_v19  ;;  %v66_v52 = vld [vmem:[#allocation5 + $0x18] sm:$0xff]  ;;  %v113_v55 = vld [vmem:[#allocation5 + $0x190] sm:$0xff]  ;;  %v112_v59 = vld [vmem:[#allocation5 + $0x188] sm:$0xff] }
  0x39   :  { %v98_v53 = vld [vmem:[#allocation5 + $0x118] sm:$0xff]  ;;  %v65_v56 = vld [vmem:[#allocation5 + $0x10] sm:$0xff]  ;;  %v64_v60 = vld [vmem:[#allocation5 + $0x8] sm:$0xff] }
  0x3a   :  { %562 = vmatpush3.xpose.msra.mxu0 %v74_v20  ;;  %v97_v57 = vld [vmem:[#allocation5 + $0x110] sm:$0xff]  ;;  %v96_v61 = vld [vmem:[#allocation5 + $0x108] sm:$0xff]  ;;  %v79_v62 = vld [vmem:[#allocation5 + $0x80] sm:$0xff] }
  0x3b   :  { %596 = vmatpush3.xpose.msra.mxu1 %v106_v21  ;;  %563 = vmatprep.subr.mxu0 %v89_v22  ;;  %v111_v63 = vld [vmem:[#allocation5 + $0x180] sm:$0xff]  ;;  %v158_v3 = vld [vmem:[#allocation5 + $0x2f8] sm:$0xff]  ;;  %v157_v11 = vld [vmem:[#allocation5 + $0x2f0] sm:$0xff] }
  0x3c   :  { %597 = vmatprep.subr.mxu1 %v121_v23  ;;  %v63_v1 = vld [vmem:[#allocation5] sm:$0xff]  ;;  %v142_v9 = vld [vmem:[#allocation5 + $0x278] sm:$0xff]  ;;  %v173_v12 = vld [vmem:[#allocation5 + $0x370] sm:$0xff] }
  0x3d   :  { %v95_v2 = vld [vmem:[#allocation5 + $0x100] sm:$0xff]  ;;  %v174_v10 = vld [vmem:[#allocation5 + $0x378] sm:$0xff]  ;;  %v156_v13 = vld [vmem:[#allocation5 + $0x2e8] sm:$0xff] }
  0x3e   :  { %564 = vmatpush3.xpose.msra.mxu0 %v73_v24  ;;  %v140_v14 = vld [vmem:[#allocation5 + $0x268] sm:$0xff]  ;;  %v155_v16 = vld [vmem:[#allocation5 + $0x2e0] sm:$0xff]  ;;  %v154_v19 = vld [vmem:[#allocation5 + $0x2d8] sm:$0xff] }
  0x3f   :  { %598 = vmatpush3.xpose.msra.mxu1 %v105_v25  ;;  %565 = vmatprep.subr.mxu0 %v88_v26  ;;  %v172_v15 = vld [vmem:[#allocation5 + $0x368] sm:$0xff]  ;;  %v139_v17 = vld [vmem:[#allocation5 + $0x260] sm:$0xff]  ;;  %v138_v20 = vld [vmem:[#allocation5 + $0x258] sm:$0xff] }
  0x40   :  { %599 = vmatprep.subr.mxu1 %v120_v27  ;;  %v171_v18 = vld [vmem:[#allocation5 + $0x360] sm:$0xff]  ;;  %v170_v21 = vld [vmem:[#allocation5 + $0x358] sm:$0xff]  ;;  %v153_v22 = vld [vmem:[#allocation5 + $0x2d0] sm:$0xff] }
  0x41   :  { %v137_v23 = vld [vmem:[#allocation5 + $0x250] sm:$0xff]  ;;  %v152_v25 = vld [vmem:[#allocation5 + $0x2c8] sm:$0xff] }
  0x42   :  { %566 = vmatpush3.xpose.msra.mxu0 %v72_v28  ;;  %v169_v24 = vld [vmem:[#allocation5 + $0x350] sm:$0xff]  ;;  %v136_v26 = vld [vmem:[#allocation5 + $0x248] sm:$0xff]  ;;  %v151_v28 = vld [vmem:[#allocation5 + $0x2c0] sm:$0xff] }
  0x43   :  { %600 = vmatpush3.xpose.msra.mxu1 %v104_v29  ;;  %567 = vmatprep.subr.mxu0 %v87_v30  ;;  %v168_v27 = vld [vmem:[#allocation5 + $0x348] sm:$0xff]  ;;  %v135_v29 = vld [vmem:[#allocation5 + $0x240] sm:$0xff] }
  0x44   :  { %601 = vmatprep.subr.mxu1 %v119_v31  ;;  %v167_v30 = vld [vmem:[#allocation5 + $0x340] sm:$0xff]  ;;  %v150_v31 = vld [vmem:[#allocation5 + $0x2b8] sm:$0xff] }
  0x46   :  { %568 = vmatpush3.xpose.msra.mxu0 %v71_v32  ;;  %v134_v32 = vld [vmem:[#allocation5 + $0x238] sm:$0xff] }
  0x47   :  { %602 = vmatpush3.xpose.msra.mxu1 %v103_v33  ;;  %569 = vmatprep.subr.mxu0 %v86_v34  ;;  %v166_v33 = vld [vmem:[#allocation5 + $0x338] sm:$0xff]  ;;  %v149_v34 = vld [vmem:[#allocation5 + $0x2b0] sm:$0xff] }
  0x48   :  { %603 = vmatprep.subr.mxu1 %v118_v35  ;;  %v133_v35 = vld [vmem:[#allocation5 + $0x230] sm:$0xff] }
  0x4a   :  { %570 = vmatpush3.xpose.msra.mxu0 %v70_v36  ;;  %v165_v36 = vld [vmem:[#allocation5 + $0x330] sm:$0xff] }
  0x4b   :  { %604 = vmatpush3.xpose.msra.mxu1 %v102_v37  ;;  %571 = vmatprep.subr.mxu0 %v85_v38  ;;  %v148_v37 = vld [vmem:[#allocation5 + $0x2a8] sm:$0xff] }
  0x4c   :  { %605 = vmatprep.subr.mxu1 %v117_v39  ;;  %v132_v38 = vld [vmem:[#allocation5 + $0x228] sm:$0xff] }
  0x4d   :  { %v164_v39 = vld [vmem:[#allocation5 + $0x328] sm:$0xff] }
  0x4e   :  { %572 = vmatpush3.xpose.msra.mxu0 %v69_v40  ;;  %v147_v40 = vld [vmem:[#allocation5 + $0x2a0] sm:$0xff] }
  0x4f   :  { %606 = vmatpush3.xpose.msra.mxu1 %v101_v41  ;;  %573 = vmatprep.subr.mxu0 %v84_v42  ;;  %v131_v41 = vld [vmem:[#allocation5 + $0x220] sm:$0xff] }
  0x50   :  { %607 = vmatprep.subr.mxu1 %v116_v43  ;;  %v163_v42 = vld [vmem:[#allocation5 + $0x320] sm:$0xff]  ;;  %v146_v43 = vld [vmem:[#allocation5 + $0x298] sm:$0xff] }
  0x52   :  { %574 = vmatpush3.xpose.msra.mxu0 %v68_v44  ;;  %v130_v44 = vld [vmem:[#allocation5 + $0x218] sm:$0xff] }
  0x53   :  { %608 = vmatpush3.xpose.msra.mxu1 %v100_v45  ;;  %575 = vmatprep.subr.mxu0 %v83_v46  ;;  %v162_v45 = vld [vmem:[#allocation5 + $0x318] sm:$0xff]  ;;  %v145_v46 = vld [vmem:[#allocation5 + $0x290] sm:$0xff] }
  0x54   :  { %609 = vmatprep.subr.mxu1 %v115_v47  ;;  %v129_v47 = vld [vmem:[#allocation5 + $0x210] sm:$0xff] }
  0x56   :  { %576 = vmatpush3.xpose.msra.mxu0 %v67_v48  ;;  %v161_v48 = vld [vmem:[#allocation5 + $0x310] sm:$0xff] }
  0x57   :  { %610 = vmatpush3.xpose.msra.mxu1 %v99_v49  ;;  %577 = vmatprep.subr.mxu0 %v82_v50  ;;  %v144_v49 = vld [vmem:[#allocation5 + $0x288] sm:$0xff] }
  0x58   :  { %611 = vmatprep.subr.mxu1 %v114_v51  ;;  %v128_v50 = vld [vmem:[#allocation5 + $0x208] sm:$0xff] }
  0x59   :  { %v160_v51 = vld [vmem:[#allocation5 + $0x308] sm:$0xff] }
  0x5a   :  { %578 = vmatpush3.xpose.msra.mxu0 %v66_v52  ;;  %v143_v52 = vld [vmem:[#allocation5 + $0x280] sm:$0xff] }
  0x5b   :  { %612 = vmatpush3.xpose.msra.mxu1 %v98_v53  ;;  %579 = vmatprep.subr.mxu0 %v81_v54  ;;  %v127_v53 = vld [vmem:[#allocation5 + $0x200] sm:$0xff] }
  0x5c   :  { %613 = vmatprep.subr.mxu1 %v113_v55  ;;  %v159_v54 = vld [vmem:[#allocation5 + $0x300] sm:$0xff] }
  0x5d   :  { %v187_v55 = vld [vmem:[#allocation5 + $0x3e0] sm:$0xff] }
  0x5e   :  { %580 = vmatpush3.xpose.msra.mxu0 %v65_v56  ;;  %v186_v56 = vld [vmem:[#allocation5 + $0x3d8] sm:$0xff] }
  0x5f   :  { %614 = vmatpush3.xpose.msra.mxu1 %v97_v57  ;;  %581 = vmatprep.subr.mxu0 %v80_v58  ;;  %v185_v57 = vld [vmem:[#allocation5 + $0x3d0] sm:$0xff]  ;;  %v184_v58 = vld [vmem:[#allocation5 + $0x3c8] sm:$0xff] }
  0x60   :  { %615 = vmatprep.subr.mxu1 %v112_v59  ;;  %v183_v59 = vld [vmem:[#allocation5 + $0x3c0] sm:$0xff] }
  0x62   :  { %582 = vmatpush3.xpose.msra.mxu0 %v64_v60  ;;  %v182_v60 = vld [vmem:[#allocation5 + $0x3b8] sm:$0xff] }
  0x63   :  { %616 = vmatpush3.xpose.msra.mxu1 %v96_v61  ;;  %583 = vmatprep.subr.mxu0 %v79_v62  ;;  %v181_v61 = vld [vmem:[#allocation5 + $0x3b0] sm:$0xff]  ;;  %v180_v62 = vld [vmem:[#allocation5 + $0x3a8] sm:$0xff] }
  0x64   :  { %617 = vmatprep.subr.mxu1 %v111_v63  ;;  %v179_v63 = vld [vmem:[#allocation5 + $0x3a0] sm:$0xff] }
  0x66   :  { %584 = vmatpush3.xpose.msra.mxu0 %v63_v1  ;;  %v178_v1 = vld [vmem:[#allocation5 + $0x398] sm:$0xff] }
  0x67   :  { %618 = vmatpush3.xpose.msra.mxu1 %v95_v2  ;;  %621 = vmatprep.subr.mxu0 %v158_v3  ;;  %v177_v2 = vld [vmem:[#allocation5 + $0x390] sm:$0xff]  ;;  %v176_v3 = vld [vmem:[#allocation5 + $0x388] sm:$0xff] }
  0x68   :  { %443 = vmatprep.subr.mxu1 %v778_v4 }
  0xb2   :  { %v58_v5 = vpop.xlane.xlu0 %57 }
  0xb3   :  { %v59_v6 = vmax.f32 %v58_v5, 1e-24  ;;  %v175_v5 = vld [vmem:[#allocation5 + $0x380] sm:$0xff] }
  0xb5   :  { %663 = vrsqrt.f32 %v59_v6  ;;  %v190_v6 = vlaneseq }
  0xc2   :  { %v664_v7 = vpop.eup %663 }
  0xc3   :  { %v821_v8 = vmul.f32 %v664_v7, %v815_v0  ;;  %v141_v0 = vld [vmem:[#allocation5 + $0x270] sm:$0xff]  ;;  %v191_v7 = vshrl.u32 %v190_v6, 7 }
  0xc5   :  { %62 = vst [vmem:[#allocation8] sm:$0xff] %v821_v8  ;;  %585 = vmatprep.mubr.f32.mxu0 %v821_v8  ;;  %619 = vmatprep.mubr.f32.mxu1 %v821_v8 }
  0xc6   :  { %586 = vmatmul.mubr.f32.vlgmr.msra.gmra.mxu0 %v821_v8  ;;  %620 = vmatmul.mubr.f32.vlgmr.msra.gmra.mxu1 %v821_v8 }
  0xc7   :  { %622 = vmatpush3.xpose.msra.mxu0 %v142_v9  ;;  %444 = vmatpush1.xpose.msra.mxu1 %v174_v10  ;;  %v192_v9 = vsub.s32 0, %v191_v7  ;;  %v200_v10 = vsub.s32 2, %v191_v7 }
  0xc8   :  { %653 = vmatprep.mubr.f32.mxu0 %v821_v8  ;;  %623 = vmatprep.subr.mxu0 %v157_v11  ;;  %v188_v11 = vld [vmem:[#allocation7] sm:$0xff] }
  0xc9   :  { %445 = vmatprep.subr.mxu1 %v778_v4  ;;  %507 = vmatprep.mubr.f32.mxu1 %v778_v4 }
  0xcb   :  { %624 = vmatpush3.xpose.msra.mxu0 %v141_v0  ;;  %446 = vmatpush1.xpose.msra.mxu1 %v173_v12 }
  0xcc   :  { %625 = vmatprep.subr.mxu0 %v156_v13  ;;  %447 = vmatprep.subr.mxu1 %v778_v4 }
  0xcf   :  { %626 = vmatpush3.xpose.msra.mxu0 %v140_v14  ;;  %448 = vmatpush1.xpose.msra.mxu1 %v172_v15 }
  0xd0   :  { %627 = vmatprep.subr.mxu0 %v155_v16  ;;  %449 = vmatprep.subr.mxu1 %v778_v4 }
  0xd3   :  { %628 = vmatpush3.xpose.msra.mxu0 %v139_v17  ;;  %450 = vmatpush1.xpose.msra.mxu1 %v171_v18 }
  0xd4   :  { %629 = vmatprep.subr.mxu0 %v154_v19  ;;  %451 = vmatprep.subr.mxu1 %v778_v4 }
  0xd7   :  { %630 = vmatpush3.xpose.msra.mxu0 %v138_v20  ;;  %452 = vmatpush1.xpose.msra.mxu1 %v170_v21 }
  0xd8   :  { %631 = vmatprep.subr.mxu0 %v153_v22  ;;  %453 = vmatprep.subr.mxu1 %v778_v4 }
  0xdb   :  { %632 = vmatpush3.xpose.msra.mxu0 %v137_v23  ;;  %454 = vmatpush1.xpose.msra.mxu1 %v169_v24 }
  0xdc   :  { %633 = vmatprep.subr.mxu0 %v152_v25  ;;  %455 = vmatprep.subr.mxu1 %v778_v4 }
  0xdf   :  { %634 = vmatpush3.xpose.msra.mxu0 %v136_v26  ;;  %456 = vmatpush1.xpose.msra.mxu1 %v168_v27 }
  0xe0   :  { %635 = vmatprep.subr.mxu0 %v151_v28  ;;  %457 = vmatprep.subr.mxu1 %v778_v4 }
  0xe3   :  { %636 = vmatpush3.xpose.msra.mxu0 %v135_v29  ;;  %458 = vmatpush1.xpose.msra.mxu1 %v167_v30 }
  0xe4   :  { %637 = vmatprep.subr.mxu0 %v150_v31  ;;  %459 = vmatprep.subr.mxu1 %v778_v4 }
  0xe7   :  { %638 = vmatpush3.xpose.msra.mxu0 %v134_v32  ;;  %460 = vmatpush1.xpose.msra.mxu1 %v166_v33 }
  0xe8   :  { %639 = vmatprep.subr.mxu0 %v149_v34  ;;  %461 = vmatprep.subr.mxu1 %v778_v4 }
  0xeb   :  { %640 = vmatpush3.xpose.msra.mxu0 %v133_v35  ;;  %462 = vmatpush1.xpose.msra.mxu1 %v165_v36 }
  0xec   :  { %641 = vmatprep.subr.mxu0 %v148_v37  ;;  %463 = vmatprep.subr.mxu1 %v778_v4 }
  0xef   :  { %642 = vmatpush3.xpose.msra.mxu0 %v132_v38  ;;  %464 = vmatpush1.xpose.msra.mxu1 %v164_v39 }
  0xf0   :  { %643 = vmatprep.subr.mxu0 %v147_v40  ;;  %465 = vmatprep.subr.mxu1 %v778_v4 }
  0xf3   :  { %644 = vmatpush3.xpose.msra.mxu0 %v131_v41  ;;  %466 = vmatpush1.xpose.msra.mxu1 %v163_v42 }
  0xf4   :  { %645 = vmatprep.subr.mxu0 %v146_v43  ;;  %467 = vmatprep.subr.mxu1 %v778_v4 }
  0xf7   :  { %646 = vmatpush3.xpose.msra.mxu0 %v130_v44  ;;  %468 = vmatpush1.xpose.msra.mxu1 %v162_v45 }
  0xf8   :  { %647 = vmatprep.subr.mxu0 %v145_v46  ;;  %469 = vmatprep.subr.mxu1 %v778_v4 }
  0xfb   :  { %648 = vmatpush3.xpose.msra.mxu0 %v129_v47  ;;  %470 = vmatpush1.xpose.msra.mxu1 %v161_v48 }
  0xfc   :  { %649 = vmatprep.subr.mxu0 %v144_v49  ;;  %471 = vmatprep.subr.mxu1 %v778_v4 }
  0xff   :  { %650 = vmatpush3.xpose.msra.mxu0 %v128_v50  ;;  %472 = vmatpush1.xpose.msra.mxu1 %v160_v51 }
 0x100   :  { %651 = vmatprep.subr.mxu0 %v143_v52  ;;  %473 = vmatprep.subr.mxu1 %v778_v4 }
 0x103   :  { %652 = vmatpush3.xpose.msra.mxu0 %v127_v53  ;;  %474 = vmatpush1.xpose.msra.mxu1 %v159_v54 }
 0x104   :  { %481 = vmatprep.subr.mxu1 %v778_v4 }
 0x106   :  { %654 = vmatmul.mubr.f32.vlgmr.msra.gmra.mxu0 %v821_v8 }
 0x107   :  { %482 = vmatpush2.xpose.msra.mxu1 %v187_v55 }
 0x108   :  { %483 = vmatprep.subr.mxu1 %v778_v4 }
 0x10b   :  { %484 = vmatpush2.xpose.msra.mxu1 %v186_v56 }
 0x10c   :  { %485 = vmatprep.subr.mxu1 %v778_v4 }
 0x10f   :  { %486 = vmatpush2.xpose.msra.mxu1 %v185_v57 }
 0x110   :  { %487 = vmatprep.subr.mxu1 %v778_v4 }
 0x113   :  { %488 = vmatpush2.xpose.msra.mxu1 %v184_v58 }
 0x114   :  { %489 = vmatprep.subr.mxu1 %v778_v4 }
 0x117   :  { %490 = vmatpush2.xpose.msra.mxu1 %v183_v59 }
 0x118   :  { %491 = vmatprep.subr.mxu1 %v778_v4 }
 0x11b   :  { %492 = vmatpush2.xpose.msra.mxu1 %v182_v60 }
 0x11c   :  { %493 = vmatprep.subr.mxu1 %v778_v4 }
 0x11f   :  { %494 = vmatpush2.xpose.msra.mxu1 %v181_v61 }
 0x120   :  { %495 = vmatprep.subr.mxu1 %v778_v4 }
 0x123   :  { %496 = vmatpush2.xpose.msra.mxu1 %v180_v62 }
 0x124   :  { %497 = vmatprep.subr.mxu1 %v778_v4 }
 0x127   :  { %498 = vmatpush2.xpose.msra.mxu1 %v179_v63 }
 0x128   :  { %499 = vmatprep.subr.mxu1 %v778_v4 }
 0x12b   :  { %500 = vmatpush2.xpose.msra.mxu1 %v178_v1 }
 0x12c   :  { %501 = vmatprep.subr.mxu1 %v778_v4 }
 0x12f   :  { %502 = vmatpush2.xpose.msra.mxu1 %v177_v2 }
 0x130   :  { %503 = vmatprep.subr.mxu1 %v778_v4 }
 0x133   :  { %504 = vmatpush2.xpose.msra.mxu1 %v176_v3 }
 0x134   :  { %505 = vmatprep.subr.mxu1 %v778_v4 }
 0x137   :  { %506 = vmatpush2.xpose.msra.mxu1 %v175_v5 }
 0x13a   :  { %508 = vmatmul.mubr.f32.vlgmr.msra.gmra.mxu1 %v821_v8 }
 0x13b   :  { %736 = shalt.err (!%p733_p5)
}
 0x13c   :  { %532 = dma.vmem_to_hbm [thread:$0]  %s530_s2, 128, %s869_s3, [#allocation4]   ;;  %v196_v4 = vsub.s32 1, %v191_v7  ;;  %v204_v8 = vsub.s32 3, %v191_v7  ;;  %v193_v0 = vrot.slane %v188_v11, %v192_v9  ;;  %v201_v12 = vrot.slane %v188_v11, %v200_v10 }
 0x13d   :  { %v208_v23 = vsub.s32 4, %v191_v7  ;;  %v212_v24 = vsub.s32 5, %v191_v7  ;;  %v216_v31 = vsub.s32 6, %v191_v7  ;;  %v220_v32 = vsub.s32 7, %v191_v7  ;;  %s780_s3 = smov [#allocation9]  }
 0x13e   :  { %v197_v13 = vrot.slane %v188_v11, %v196_v4  ;;  %v205_v14 = vrot.slane %v188_v11, %v204_v8  ;;  %s539_s8 = sshll.u32 %s780_s3, 4  ;;  %vm521_vm0 = vcmask 850944   ;;  %s540_s8 = int_to_ptr.vmem [resolvable:$true] %s539_s8 }
 0x13f   :  { %v209_v25 = vrot.slane %v188_v11, %v208_v23  ;;  %v213_v26 = vrot.slane %v188_v11, %v212_v24  ;;  %v217_v33 = vrot.slane %v188_v11, %v216_v31  ;;  %v221_v34 = vrot.slane %v188_v11, %v220_v32  ;;  %s745_s9 = scalar_lea.vmem %s540_s8, 1024  ;;  %p750_p7 = scmp.lt.s32.totalorder %s540_s8, %s540_s8 }
 0x140   :  { %p746_p6 = scmp.ne.s32.totalorder %s540_s8, %s745_s9  ;;  %p751_p8 = scmp.lt.s32.totalorder %s745_s9, %s745_s9 }
 0x142   :  { %p752_p9 = por %p751_p8, %p750_p7 }
 0x144   :  { %p753_p10 = pnand %p752_p9, %p746_p6 }
 0x186   :  { %v296_v15 = vpop.f32.mrf.mxu0  ;;  %v367_v16 = vpop.f32.mrf.mxu1 }
 0x187   :  { %v297_v17 = vadd.f32 %v296_v15, %v193_v0  ;;  %v368_v18 = vadd.f32 %v367_v16, %v201_v12 }
 0x188   :  { %v298_v19 = vpop.f32.mrf.mxu0  ;;  %v369_v20 = vpop.f32.mrf.mxu1 }
 0x189   :  { %514 = vst [vmem:[#allocation9] sm:$0xff] %v297_v17  ;;  %516 = vst [vmem:[#allocation9 + $0x10] sm:$0xff] %v368_v18  ;;  %v299_v21 = vadd.f32 %v298_v19, %v197_v13  ;;  %v370_v22 = vadd.f32 %v369_v20, %v205_v14 }
 0x18b   :  { %515 = vst [vmem:[#allocation9 + $0x8] sm:$0xff] %v299_v21  ;;  %517 = vst [vmem:[#allocation9 + $0x18] sm:$0xff] %v370_v22 }
 0x1c6   :  { %v438_v27 = vpop.f32.mrf.mxu0 }
 0x1c7   :  { %v439_v28 = vadd.f32 %v438_v27, %v209_v25 }
 0x1c8   :  { %v440_v29 = vpop.f32.mrf.mxu0 }
 0x1c9   :  { %518 = vst [vmem:[#allocation9 + $0x20] sm:$0xff] %v439_v28  ;;  %v441_v30 = vadd.f32 %v440_v29, %v213_v26 }
 0x1cb   :  { %519 = vst [vmem:[#allocation9 + $0x28] sm:$0xff] %v441_v30 }
 0x1fa   :  { %v509_v35 = vpop.f32.mrf.mxu1 }
 0x1fb   :  { %v510_v36 = vadd.f32 %v509_v35, %v217_v33 }
 0x1fc   :  { %v511_v37 = vpop.f32.mrf.mxu1 }
 0x1fd   :  { %520 = vst [vmem:[#allocation9 + $0x30] sm:$0xff] %v510_v36  ;;  %v512_v38 = vadd.f32 %v511_v37, %v221_v34 }
 0x1ff   :  { %522 = vst.msk [vmem:[#allocation9 + $0x38] sm:$0xff] %vm521_vm0, %v512_v38 }
 0x200   :  { %756 = shalt.err (!%p753_p10)
}
 0x201   :  { %542 = dma.vmem_to_hbm [thread:$0]  %s540_s8, 1024, %s870_s4, [#allocation10]  }
 0x202   :  { %769 = dma.done.wait [#allocation4], 128  }
 0x203   :  { %770 = vsyncadd [#allocation4], 4294967168 }
 0x204   :  { %771 = dma.done.wait [#allocation10], 1024  }
 0x205   :  { %772 = vsyncadd [#allocation10], 4294966272 }
 0x206   :  { %549 = vsyncpa [#allocation3], 1 }
 0x207   :  { %550 = vsyncpa [#allocation6], 1 }
 0x208   :  { %551 = vsyncpa [#allocation4], 1 }
 0x209   :  { %552 = vsyncpa [#allocation10], 1 }

</bundles_post_ra>
